<compile_context>
chip_gen: v7x
topology: tpu7x:2x2x1
jax: 0.10.0
libtpu: 0.0.40
codegen_flags: <defaults>
</compile_context>

<pallas_src>
import jax
import jax.numpy as jnp
from jax.experimental import pallas as pl
from jax.experimental.pallas import tpu as pltpu


def _round_up(x, m):
    return ((x + m - 1) // m) * m


def neumf_kernel(symps_ref, label_ref, symp_tab_ref, dise_fused_ref,
                 w1a_ref, w2_ref, b2_ref, out_ref):
    # Feature-major layout: batch on lanes, feature dim D on sublanes.
    # symps_ref      : (S, TILE_B)   int32  symptom ids (0 = padding)
    # label_ref      : (1, TILE_B)   int32  disease ids
    # symp_tab_ref   : (D, V_S)      f32    symptom table, feature-major
    # dise_fused_ref : (D, V_D)      f32    (relu(dise_table) @ w1b.T + b1).T
    # w1a_ref        : (D, D)        f32    w1[:, :D]  (user half of linear_1)
    # w2_ref         : (D, 1)        f32    linear_2 weight as a sublane column
    # b2_ref         : (1, 1)        f32    SMEM scalar
    # out_ref        : (1, TILE_B)   f32    lane-dense scores for this tile
    symps = symps_ref[...]                                   # (S, TILE_B)
    S, tile_b = symps.shape
    V_S = symp_tab_ref.shape[1]
    V_D = dise_fused_ref.shape[1]

    # counts[v, b] = multiplicity of symptom id v in column b.  The per-s row
    # is a stride-0 sublane broadcast in this layout; accumulate in int32 and
    # cast to f32 once after the loop.
    vocab = jax.lax.broadcasted_iota(jnp.int32, (V_S, tile_b), 0)
    counts = jnp.zeros((V_S, tile_b), jnp.int32)
    for s in range(S):
        counts = counts + (symps[s:s + 1, :] == vocab).astype(jnp.int32)
    counts_f = counts.astype(jnp.float32)

    # sum_s table[symps[s, b]]  ==  table_fm @ counts   (padding row 0 is zero).
    emb_sum = jnp.dot(symp_tab_ref[...], counts_f,
                      preferred_element_type=jnp.float32)    # (D, TILE_B)

    # real_num_neighbor / weight, matching the PyTorch clamp semantics.
    # (exact reciprocal kept: approx=True risks the 1e-4 reference tolerance)
    cnt = jnp.sum((symps != 0).astype(jnp.float32), axis=0, keepdims=True)
    weight = 1.0 / (cnt + 1e-8)
    weight = jnp.where(weight >= 1e8, 0.0, weight)
    hu = jnp.maximum(emb_sum * weight, 0.0)                  # relu(emb_user), (D, TILE_B)

    # Disease path fully folded offline: relu(dise_table) @ w1b.T + b1 is a
    # precomputed feature-major table, gathered by a one-hot matmul.
    lbl = label_ref[...]                                     # (1, TILE_B)
    dvocab = jax.lax.broadcasted_iota(jnp.int32, (V_D, tile_b), 0)
    d_onehot = (lbl == dvocab).astype(jnp.float32)           # (V_D, TILE_B)
    h_dise = jnp.dot(dise_fused_ref[...], d_onehot,
                     preferred_element_type=jnp.float32)     # (D, TILE_B)

    # h = relu(linear_1(relu(cat(u, d))))  -- concat removed, disease half and
    # the bias already baked into h_dise.
    h = jnp.maximum(jnp.dot(w1a_ref[...], hu,
                            preferred_element_type=jnp.float32) + h_dise, 0.0)

    # linear_2: multiply by the weight column and sublane-reduce over D;
    # result is already the lane-dense (1, TILE_B) output row.
    pred = jnp.sum(h * w2_ref[...], axis=0, keepdims=True) + b2_ref[0, 0]
    out_ref[...] = pred


def _choose_tile_b(B, requested):
    """Large batch tiles (amortize per-grid-step overhead) but keep >=2 grid
    tiles when the batch allows, so both v7x TensorCores get work."""
    requested = max(128, _round_up(requested, 128))
    b128 = _round_up(B, 128)
    tile = min(requested, b128)
    if b128 >= 256 and b128 // tile < 2:
        tile = max(128, _round_up(b128 // 2, 128))
    return tile


def neumf_forward(symps, label, symp_table, dise_table, w1, b1, w2, b2,
                  *, tile_b=1024):
    """Eval-mode NeuMF forward -> pred_score of shape (B, 1)."""
    B, S = symps.shape
    D = symp_table.shape[1]

    tile_b = _choose_tile_b(B, tile_b)
    B_pad = _round_up(B, tile_b)
    num_tiles = B_pad // tile_b

    # Feature-major inputs: ids as (S, B_pad), labels as (1, B_pad); padded
    # batch columns get id/label 0 and are discarded after the call.
    symps_fm = jnp.zeros((S, B_pad), jnp.int32).at[:, :B].set(symps.astype(jnp.int32).T)
    label_fm = jnp.zeros((1, B_pad), jnp.int32).at[0, :B].set(label.astype(jnp.int32))

    # Feature-major tables, vocab padded to a multiple of 8 with zero columns
    # (padding id 0 column stays zero; extra columns are never selected).
    def pad_cols(tab_fm):
        d, v = tab_fm.shape
        v_pad = _round_up(v, 8)
        return jnp.zeros((d, v_pad), tab_fm.dtype).at[:, :v].set(tab_fm)

    symp_tab_fm = pad_cols(symp_table.T.astype(jnp.float32))              # (D, V_S)

    # Fold the disease half of linear_1 (and its bias) into the table:
    #   dise_fused[v] = relu(dise_table[v]) @ w1[:, D:].T + b1
    dise_fused = (jnp.maximum(dise_table.astype(jnp.float32), 0.0)
                  @ w1[:, D:].T.astype(jnp.float32)
                  + b1.astype(jnp.float32)[None, :])                      # (V_D, D)
    dise_fused_fm = pad_cols(dise_fused.T)                                # (D, V_D)

    V_S = symp_tab_fm.shape[1]
    V_D = dise_fused_fm.shape[1]

    w1a_fm = w1[:, :D].astype(jnp.float32)                                # (D, D)
    w2_col = w2.reshape(1, D).T.astype(jnp.float32)                       # (D, 1)
    b2_2d = b2.reshape(1, 1).astype(jnp.float32)

    # Rough VMEM footprint; only raise the scoped-VMEM limit when the default
    # (16 MiB on v5e) would be exceeded at very large tile_b.
    est_bytes = 4 * (D * (V_S + V_D + D + 1)
                     + 2 * (S + 2) * tile_b
                     + (V_S + V_D + 4 * D + 4) * tile_b)
    vmem_limit = None
    if est_bytes > 16 * 1024 * 1024:
        vmem_limit = min(2 * est_bytes, 48 * 1024 * 1024)

    out = pl.pallas_call(
        neumf_kernel,
        out_shape=jax.ShapeDtypeStruct((1, B_pad), jnp.float32),
        grid=(num_tiles,),
        in_specs=[
            pl.BlockSpec((S, tile_b), lambda i: (0, i)),        # symptom ids (streamed)
            pl.BlockSpec((1, tile_b), lambda i: (0, i)),        # disease labels (streamed)
            pl.BlockSpec((D, V_S), lambda i: (0, 0)),           # symp table (resident)
            pl.BlockSpec((D, V_D), lambda i: (0, 0)),           # fused disease table (resident)
            pl.BlockSpec((D, D), lambda i: (0, 0)),             # w1a (resident)
            pl.BlockSpec((D, 1), lambda i: (0, 0)),             # w2 column (resident)
            pl.BlockSpec(memory_space=pltpu.MemorySpace.SMEM),  # b2 scalar in SMEM
        ],
        out_specs=pl.BlockSpec((1, tile_b), lambda i: (0, i)),  # lane-dense output
        compiler_params=pltpu.CompilerParams(
            dimension_semantics=("parallel",),
            vmem_limit_bytes=vmem_limit),
    )(symps_fm, label_fm, symp_tab_fm, dise_fused_fm, w1a_fm, w2_col, b2_2d)

    return out[0, :B].reshape(B, 1)


if __name__ == "__main__":
    num_symp = 50
    num_dise = 10
    embed_dim = 32      # symp_embedding_dim
    B, S = 260, 8       # small batch; exercises multiple grid tiles + padding

    key = jax.random.PRNGKey(0)
    k_symp, k_dise, k_w1, k_b1, k_w2, k_b2, k_ids, k_lbl = jax.random.split(key, 8)

    # Embedding tables (padding_idx=0 -> row 0 zeroed).
    symp_table = 0.1 * jax.random.normal(k_symp, (num_symp + 1, embed_dim), jnp.float32)
    symp_table = symp_table.at[0].set(0.0)
    dise_table = 0.1 * jax.random.normal(k_dise, (num_dise + 1, embed_dim), jnp.float32)
    dise_table = dise_table.at[0].set(0.0)

    # linear_1: (embed_dim, 2*embed_dim) weight, (embed_dim,) bias (PyTorch layout)
    w1 = 0.1 * jax.random.normal(k_w1, (embed_dim, 2 * embed_dim), jnp.float32)
    b1 = 0.1 * jax.random.normal(k_b1, (embed_dim,), jnp.float32)
    # linear_2: (1, embed_dim) weight, (1,) bias
    w2 = 0.1 * jax.random.normal(k_w2, (1, embed_dim), jnp.float32)
    b2 = 0.1 * jax.random.normal(k_b2, (1,), jnp.float32)

    # Inputs: symptom id lists (0 = padding) and disease labels.
    symps = jax.random.randint(k_ids, (B, S), 0, num_symp + 1, dtype=jnp.int32)
    symps = symps.at[0, 4:].set(0)          # partially padded row
    symps = symps.at[1, :].set(0)           # fully padded row (weight -> 0 path)
    label = jax.random.randint(k_lbl, (B,), 1, num_dise + 1, dtype=jnp.int32)

    pred = neumf_forward(symps, label, symp_table, dise_table, w1, b1, w2, b2,
                         tile_b=1024)
    pred = jax.block_until_ready(pred)

    # Pure-JAX reference (gather + sum, concat form) for sanity.
    emb_symp = jnp.take(symp_table, symps, axis=0)
    emb_dise = jnp.take(dise_table, label, axis=0)
    cnt = jnp.sum((symps != 0).astype(jnp.float32), axis=1, keepdims=True)
    w = 1.0 / (cnt + 1e-8)
    w = jnp.where(w >= 1e8, 0.0, w)
    emb_user = jnp.sum(emb_symp, axis=1) * w
    h = jnp.maximum(jnp.concatenate([emb_user, emb_dise], axis=1), 0.0)
    h = jnp.maximum(h @ w1.T + b1, 0.0)
    ref = h @ w2.T + b2

    assert pred.shape == (B, 1)
    assert jnp.allclose(pred, ref, atol=1e-4, rtol=1e-4), \
        float(jnp.max(jnp.abs(pred - ref)))
    print("KERNEL_OK")

    # TODO(synk): training-mode branch (negative disease sampling + neg score) and
    # the host-side _array2dict conversion are out of scope for this eval-mode kernel.
</pallas_src>

<mosaic_0001>
module attributes {stable_mosaic.version = 11 : i64} {
  func.func @neumf_kernel(%arg0: i32, %arg1: memref<8x256xi32, #tpu.memory_space<vmem>>, %arg2: memref<1x256xi32, #tpu.memory_space<vmem>>, %arg3: memref<32x56xf32, #tpu.memory_space<vmem>>, %arg4: memref<32x16xf32, #tpu.memory_space<vmem>>, %arg5: memref<32x32xf32, #tpu.memory_space<vmem>>, %arg6: memref<32x1xf32, #tpu.memory_space<vmem>>, %arg7: memref<1x1xf32, #tpu.memory_space<smem>>, %arg8: memref<1x256xf32, #tpu.memory_space<vmem>>) attributes {dimension_semantics = [#tpu.dimension_semantics<parallel>], iteration_bounds = array<i64: 2>, scalar_prefetch = 0 : i64, scratch_operands = 0 : i64, tpu.core_type = #tpu.core_type<tc>, window_params = [{transform_indices = @transform_0, window_bounds = array<i64: 8, 256>}, {transform_indices = @transform_1, window_bounds = array<i64: 1, 256>}, {pipeline_mode = #tpu.pipeline_mode<synchronous>, transform_indices = @transform_2, window_bounds = array<i64: 32, 56>}, {pipeline_mode = #tpu.pipeline_mode<synchronous>, transform_indices = @transform_3, window_bounds = array<i64: 32, 16>}, {pipeline_mode = #tpu.pipeline_mode<synchronous>, transform_indices = @transform_4, window_bounds = array<i64: 32, 32>}, {pipeline_mode = #tpu.pipeline_mode<synchronous>, transform_indices = @transform_5, window_bounds = array<i64: 32, 1>}, {transform_indices = @transform_6, window_bounds = array<i64: 1, 1>}, {transform_indices = @transform_7, window_bounds = array<i64: 1, 256>}]} {
    %c0 = arith.constant 0 : index
    %c0_0 = arith.constant 0 : index
    %0 = vector.load %arg1[%c0, %c0_0] : memref<8x256xi32, #tpu.memory_space<vmem>>, vector<8x256xi32>
    %1 = tpu.iota {dimensions = array<i32: 0>} : vector<56x256xi32>
    %c0_i32 = arith.constant 0 : i32
    %2 = vector.broadcast %c0_i32 : i32 to vector<56x256xi32>
    %3 = vector.extract_strided_slice %0 {offsets = [0, 0], sizes = [1, 256], strides = [1, 1]} : vector<8x256xi32> to vector<1x256xi32>
    %4 = vector.broadcast %3 : vector<1x256xi32> to vector<56x256xi32>
    %5 = arith.cmpi eq, %4, %1 : vector<56x256xi32>
    %6 = arith.extui %5 : vector<56x256xi1> to vector<56x256xi32>
    %7 = arith.addi %2, %6 : vector<56x256xi32>
    %8 = vector.extract_strided_slice %0 {offsets = [1, 0], sizes = [1, 256], strides = [1, 1]} : vector<8x256xi32> to vector<1x256xi32>
    %9 = vector.broadcast %8 : vector<1x256xi32> to vector<56x256xi32>
    %10 = arith.cmpi eq, %9, %1 : vector<56x256xi32>
    %11 = arith.extui %10 : vector<56x256xi1> to vector<56x256xi32>
    %12 = arith.addi %7, %11 : vector<56x256xi32>
    %13 = vector.extract_strided_slice %0 {offsets = [2, 0], sizes = [1, 256], strides = [1, 1]} : vector<8x256xi32> to vector<1x256xi32>
    %14 = vector.broadcast %13 : vector<1x256xi32> to vector<56x256xi32>
    %15 = arith.cmpi eq, %14, %1 : vector<56x256xi32>
    %16 = arith.extui %15 : vector<56x256xi1> to vector<56x256xi32>
    %17 = arith.addi %12, %16 : vector<56x256xi32>
    %18 = vector.extract_strided_slice %0 {offsets = [3, 0], sizes = [1, 256], strides = [1, 1]} : vector<8x256xi32> to vector<1x256xi32>
    %19 = vector.broadcast %18 : vector<1x256xi32> to vector<56x256xi32>
    %20 = arith.cmpi eq, %19, %1 : vector<56x256xi32>
    %21 = arith.extui %20 : vector<56x256xi1> to vector<56x256xi32>
    %22 = arith.addi %17, %21 : vector<56x256xi32>
    %23 = vector.extract_strided_slice %0 {offsets = [4, 0], sizes = [1, 256], strides = [1, 1]} : vector<8x256xi32> to vector<1x256xi32>
    %24 = vector.broadcast %23 : vector<1x256xi32> to vector<56x256xi32>
    %25 = arith.cmpi eq, %24, %1 : vector<56x256xi32>
    %26 = arith.extui %25 : vector<56x256xi1> to vector<56x256xi32>
    %27 = arith.addi %22, %26 : vector<56x256xi32>
    %28 = vector.extract_strided_slice %0 {offsets = [5, 0], sizes = [1, 256], strides = [1, 1]} : vector<8x256xi32> to vector<1x256xi32>
    %29 = vector.broadcast %28 : vector<1x256xi32> to vector<56x256xi32>
    %30 = arith.cmpi eq, %29, %1 : vector<56x256xi32>
    %31 = arith.extui %30 : vector<56x256xi1> to vector<56x256xi32>
    %32 = arith.addi %27, %31 : vector<56x256xi32>
    %33 = vector.extract_strided_slice %0 {offsets = [6, 0], sizes = [1, 256], strides = [1, 1]} : vector<8x256xi32> to vector<1x256xi32>
    %34 = vector.broadcast %33 : vector<1x256xi32> to vector<56x256xi32>
    %35 = arith.cmpi eq, %34, %1 : vector<56x256xi32>
    %36 = arith.extui %35 : vector<56x256xi1> to vector<56x256xi32>
    %37 = arith.addi %32, %36 : vector<56x256xi32>
    %38 = vector.extract_strided_slice %0 {offsets = [7, 0], sizes = [1, 256], strides = [1, 1]} : vector<8x256xi32> to vector<1x256xi32>
    %39 = vector.broadcast %38 : vector<1x256xi32> to vector<56x256xi32>
    %40 = arith.cmpi eq, %39, %1 : vector<56x256xi32>
    %41 = arith.extui %40 : vector<56x256xi1> to vector<56x256xi32>
    %42 = arith.addi %37, %41 : vector<56x256xi32>
    %43 = arith.sitofp %42 : vector<56x256xi32> to vector<56x256xf32>
    %c0_1 = arith.constant 0 : index
    %c0_2 = arith.constant 0 : index
    %44 = vector.load %arg3[%c0_1, %c0_2] : memref<32x56xf32, #tpu.memory_space<vmem>>, vector<32x56xf32>
    %cst = arith.constant dense<0.000000e+00> : vector<32x256xf32>
    %45 = tpu.matmul %44, %43, %cst {dimension_numbers = #tpu.dot_dimension_numbers<[1], [0], [0], [1], [0, 0, 1, 1], [], []>} : vector<32x56xf32>, vector<56x256xf32>, vector<32x256xf32> -> vector<32x256xf32>
    %c0_i32_3 = arith.constant 0 : i32
    %46 = vector.broadcast %c0_i32_3 : i32 to vector<8x256xi32>
    %47 = arith.cmpi ne, %0, %46 : vector<8x256xi32>
    %48 = arith.extui %47 : vector<8x256xi1> to vector<8x256xi32>
    %49 = arith.sitofp %48 : vector<8x256xi32> to vector<8x256xf32>
    %cst_4 = arith.constant dense<0.000000e+00> : vector<256xf32>
    %50 = vector.multi_reduction <add>, %49, %cst_4 [0] : vector<8x256xf32> to vector<256xf32>
    %51 = vector.shape_cast %50 : vector<256xf32> to vector<1x256xf32>
    %cst_5 = arith.constant 9.99999993E-9 : f32
    %52 = vector.broadcast %cst_5 : f32 to vector<1x256xf32>
    %53 = arith.addf %51, %52 : vector<1x256xf32>
    %cst_6 = arith.constant 1.000000e+00 : f32
    %54 = vector.broadcast %cst_6 : f32 to vector<1x256xf32>
    %55 = arith.divf %54, %53 : vector<1x256xf32>
    %cst_7 = arith.constant 1.000000e+08 : f32
    %56 = vector.broadcast %cst_7 : f32 to vector<1x256xf32>
    %57 = arith.cmpf oge, %55, %56 : vector<1x256xf32>
    %cst_8 = arith.constant 0.000000e+00 : f32
    %58 = vector.broadcast %cst_8 : f32 to vector<1x256xf32>
    %59 = arith.select %57, %58, %55 : vector<1x256xi1>, vector<1x256xf32>
    %60 = vector.broadcast %59 : vector<1x256xf32> to vector<32x256xf32>
    %61 = arith.mulf %45, %60 : vector<32x256xf32>
    %cst_9 = arith.constant 0.000000e+00 : f32
    %62 = vector.broadcast %cst_9 : f32 to vector<32x256xf32>
    %63 = arith.maximumf %61, %62 : vector<32x256xf32>
    %c0_10 = arith.constant 0 : index
    %c0_11 = arith.constant 0 : index
    %64 = vector.load %arg2[%c0_10, %c0_11] : memref<1x256xi32, #tpu.memory_space<vmem>>, vector<1x256xi32>
    %65 = tpu.iota {dimensions = array<i32: 0>} : vector<16x256xi32>
    %66 = vector.broadcast %64 : vector<1x256xi32> to vector<16x256xi32>
    %67 = arith.cmpi eq, %66, %65 : vector<16x256xi32>
    %68 = arith.extui %67 : vector<16x256xi1> to vector<16x256xi32>
    %69 = arith.sitofp %68 : vector<16x256xi32> to vector<16x256xf32>
    %c0_12 = arith.constant 0 : index
    %c0_13 = arith.constant 0 : index
    %70 = vector.load %arg4[%c0_12, %c0_13] : memref<32x16xf32, #tpu.memory_space<vmem>>, vector<32x16xf32>
    %cst_14 = arith.constant dense<0.000000e+00> : vector<32x256xf32>
    %71 = tpu.matmul %70, %69, %cst_14 {dimension_numbers = #tpu.dot_dimension_numbers<[1], [0], [0], [1], [0, 0, 1, 1], [], []>} : vector<32x16xf32>, vector<16x256xf32>, vector<32x256xf32> -> vector<32x256xf32>
    %c0_15 = arith.constant 0 : index
    %c0_16 = arith.constant 0 : index
    %72 = vector.load %arg5[%c0_15, %c0_16] : memref<32x32xf32, #tpu.memory_space<vmem>>, vector<32x32xf32>
    %cst_17 = arith.constant dense<0.000000e+00> : vector<32x256xf32>
    %73 = tpu.matmul %72, %63, %cst_17 {dimension_numbers = #tpu.dot_dimension_numbers<[1], [0], [0], [1], [0, 0, 1, 1], [], []>} : vector<32x32xf32>, vector<32x256xf32>, vector<32x256xf32> -> vector<32x256xf32>
    %74 = arith.addf %73, %71 : vector<32x256xf32>
    %cst_18 = arith.constant 0.000000e+00 : f32
    %75 = vector.broadcast %cst_18 : f32 to vector<32x256xf32>
    %76 = arith.maximumf %74, %75 : vector<32x256xf32>
    %c0_19 = arith.constant 0 : index
    %c0_20 = arith.constant 0 : index
    %77 = vector.load %arg6[%c0_19, %c0_20] : memref<32x1xf32, #tpu.memory_space<vmem>>, vector<32x1xf32>
    %78 = vector.broadcast %77 : vector<32x1xf32> to vector<32x256xf32>
    %79 = arith.mulf %76, %78 : vector<32x256xf32>
    %cst_21 = arith.constant dense<0.000000e+00> : vector<256xf32>
    %80 = vector.multi_reduction <add>, %79, %cst_21 [0] : vector<32x256xf32> to vector<256xf32>
    %81 = vector.shape_cast %80 : vector<256xf32> to vector<1x256xf32>
    %c0_22 = arith.constant 0 : index
    %c0_23 = arith.constant 0 : index
    %82 = memref.load %arg7[%c0_22, %c0_23] : memref<1x1xf32, #tpu.memory_space<smem>>
    %83 = vector.broadcast %82 : f32 to vector<1x256xf32>
    %84 = arith.addf %81, %83 : vector<1x256xf32>
    %c0_24 = arith.constant 0 : index
    %c0_25 = arith.constant 0 : index
    %85 = vector.load %arg8[%c0_24, %c0_25] : memref<1x256xf32, #tpu.memory_space<vmem>>, vector<1x256xf32>
    tpu.vector_store %arg8[%c0_24, %c0_25], %84 {strides = array<i32>} : memref<1x256xf32, #tpu.memory_space<vmem>>, vector<1x256xf32>,
    return
  }
  func.func @transform_0(%arg0: i32) -> (i32, i32) {
    %c0_i32 = arith.constant 0 : i32
    %c0_i32_0 = arith.constant 0 : i32
    return %c0_i32, %arg0 : i32, i32
  }
  func.func @transform_1(%arg0: i32) -> (i32, i32) {
    %c0_i32 = arith.constant 0 : i32
    %c0_i32_0 = arith.constant 0 : i32
    return %c0_i32, %arg0 : i32, i32
  }
  func.func @transform_2(%arg0: i32) -> (i32, i32) {
    %c0_i32 = arith.constant 0 : i32
    %c0_i32_0 = arith.constant 0 : i32
    %c0_i32_1 = arith.constant 0 : i32
    return %c0_i32, %c0_i32_0 : i32, i32
  }
  func.func @transform_3(%arg0: i32) -> (i32, i32) {
    %c0_i32 = arith.constant 0 : i32
    %c0_i32_0 = arith.constant 0 : i32
    %c0_i32_1 = arith.constant 0 : i32
    return %c0_i32, %c0_i32_0 : i32, i32
  }
  func.func @transform_4(%arg0: i32) -> (i32, i32) {
    %c0_i32 = arith.constant 0 : i32
    %c0_i32_0 = arith.constant 0 : i32
    %c0_i32_1 = arith.constant 0 : i32
    return %c0_i32, %c0_i32_0 : i32, i32
  }
  func.func @transform_5(%arg0: i32) -> (i32, i32) {
    %c0_i32 = arith.constant 0 : i32
    %c0_i32_0 = arith.constant 0 : i32
    %c0_i32_1 = arith.constant 0 : i32
    return %c0_i32, %c0_i32_0 : i32, i32
  }
  func.func @transform_6(%arg0: i32) -> (i32, i32) {
    %c0_i32 = arith.constant 0 : i32
    %c0_i32_0 = arith.constant 0 : i32
    %c0_i32_1 = arith.constant 0 : i32
    return %c0_i32, %c0_i32_0 : i32, i32
  }
  func.func @transform_7(%arg0: i32) -> (i32, i32) {
    %c0_i32 = arith.constant 0 : i32
    %c0_i32_0 = arith.constant 0 : i32
    return %c0_i32, %arg0 : i32, i32
  }
}

</mosaic_0001>

<bundles_post_ra>
// kernel: tpu_custom_call.1
= control target key start
LH: loop header
LB: loop body
LE: loop exit
PB: predicated region body
PF: predicated region fallthrough
CT: control target
= control target key end

     0   :  { %s2278_s0 = inlined_call_operand.vmem [shape: s32[8,512], index: 0, kind: input, shape index: {}]   ;;  %s2279_s1 = inlined_call_operand.hbm [shape: s32[1,512], index: 1, kind: input, shape index: {}]   ;;  %s2280_s2 = inlined_call_operand.vmem [shape: f32[32,56], index: 2, kind: input, shape index: {}]   ;;  %s2281_s3 = inlined_call_operand.vmem [shape: f32[32,16], index: 3, kind: input, shape index: {}]   ;;  %s2282_s4 = inlined_call_operand.vmem [shape: f32[32,32], index: 4, kind: input, shape index: {}]   ;;  %s2283_s5 = inlined_call_operand.vmem [shape: f32[32,1], index: 5, kind: input, shape index: {}]   ;;  %s2284_s6 = inlined_call_operand.<no memory space> [shape: f32[1,1], index: 6, kind: input, shape index: {}]   ;;  %s2285_s7 = inlined_call_operand.hbm [shape: f32[1,512], index: 7, kind: output, shape index: {}]  }
   0x1   :  { %12 = sst [smem:[#allocation2]] %s2284_s6 }
   0x2   :  { %13 = vsyncpa [#allocation4], 0 }
   0x3   :  { %15 = vsyncpa [#allocation4 + $0x1], 0 }
   0x4   :  { %16 = vsyncpa [#allocation5], 0 }
   0x5   :  { %18 = vsyncpa [#allocation5 + $0x1], 0  ;;  %s1570_s26 = smov 0   ;;  %s1572_s27 = smov 0  }
   0x6   :  { %s1574_s28 = smov 0   ;;  %s1576_s29 = smov 0  }
   0x7 LB: > { %s1591_s6 = sadd.s32 4294967295, %s1519_s29   ;;  %s1295_s30 = sadd.s32 4294967294, %s1519_s29   ;;  %s1519_s29 = sphi %s1576_s29, %s2300_s29   ;;  %s1515_s28 = sphi %s1574_s28, %s2299_s28   ;;  %s1511_s27 = sphi %s1572_s27, %s2298_s27   ;;  %s1507_s26 = sphi %s1570_s26, %s2297_s26  }
   0x8   : > { %s1595_s8 = sadd.s32 1, %s1519_s29   ;;  %s57_s9 = sadd.s32 1, %s1515_s28 }
   0x9   : > { %s54_s10 = ssub.s32 %s1519_s29, %s1595_s8  ;;  %p64_p0 = scmp.ne.s32.totalorder %s1515_s28, %s1511_s27 }
   0xa   : > { %p55_p1 = scmp.eq.s32.totalorder %s54_s10, 0  ;;  %p65_p2 = scmp.eq.s32.totalorder %s1519_s29, 0 }
   0xb   : > { %p70_p3 = scmp.ne.s32.totalorder %s1511_s27, %s1507_s26  ;;  %p71_p4 = scmp.eq.s32.totalorder %s1591_s6, 0 }
   0xc   : > { %s1607_s11 = scalar_select %p55_p1, %s1515_s28, %s57_s9  }
   0xd   : > { %p1609_p5 = por %p65_p2, %p64_p0  ;;  %p1613_p6 = por %p71_p4, %p70_p3 }
   0xe   : > { %p199_p7 = scmp.eq.s32.totalorder %s1591_s6, 1  ;;  %p205_p8 = scmp.eq.s32.totalorder %s1295_s30, 1 }
   0xf   : > { %p1379_p10 = scmp.lt.s32.totalorder %s1519_s29, 2  ;;  %s249_s16 = sand.u32 1, %s1515_s28  }
  0x10   : > { %p1620_p11 = por %p199_p7, %p64_p0  ;;  %p1624_p12 = por %p205_p8, %p70_p3 }
  0x11   : > { %s1333_s17 = sshll.u32 %s1519_s29, 5  ;;  %s1298_s18 = sshll.u32 %s249_s16, 1 }
  0x12   : > { %s2289_s14 = scalar_select %p1620_p11, 1, 0 }
  0x13   : > { %s2290_s15 = scalar_select %p1624_p12, 1, 0 }
  0x14   : > { %s1633_s21 = scalar_lea.hbm %s2279_s1, %s1333_s17  ;;  %s253_s22 = scalar_lea.vmem [#allocation3], %s1298_s18 }
  0x15   : > { %s261_s23 = sshll.u32 %s253_s22, 4  ;;  %p1637_p13 = pnand %p1379_p10, %p1609_p5  ;;  %s1641_s23 = int_to_ptr.vmem [resolvable:$true] %s261_s23 }
  0x16   : > { %s250_s25 = scalar_lea.sflag [#allocation4], %s249_s16  ;;  %s1423_s30 = scalar_lea.hbm %s1633_s21, 32 }
  0x17   : > { %p1424_p2 = scmp.ne.s32.totalorder %s1633_s21, %s1423_s30  ;;  %p1425_p3 = pneg %p1637_p13 }
  0x18   : > { %s1428_s12 = scalar_lea.hbm %s2279_s1, 64  ;;  %p1429_p5 = scmp.lt.u32.totalorder %s1633_s21, %s2279_s1 }
  0x19   : > { %p1426_p4 = pnand %p1425_p3, %p1424_p2  ;;  %p1430_p8 = scmp.lt.u32.totalorder %s1428_s12, %s1423_s30 }
  0x1a   : > { %p1432_p9 = scmp.lt.u32.totalorder %s1423_s30, %s1633_s21 }
  0x1b   : > { %p1427_p7 = pneg %p1426_p4  ;;  %p1431_p10 = por %p1430_p8, %p1429_p5 }
  0x1d   : > { %p1433_p0 = por %p1432_p9, %p1431_p10 }
  0x1f   : > { %p1434_p1 = pnand %p1433_p0, %p1427_p7 }
  0x21   : > { %1437 = shalt.err (!%p1434_p1)
}
  0x22   : > { %s1438_s16 = scalar_lea.vmem %s1641_s23, 32  ;;  %s1521_s19 = smov [#allocation3]  }
  0x23   : > { %p1439_p2 = scmp.ne.s32.totalorder %s1641_s23, %s1438_s16  ;;  %s1443_s20 = sshll.u32 %s1521_s19, 4  ;;  %s1444_s20 = int_to_ptr.vmem [resolvable:$false] %s1443_s20 }
  0x24   : > { %s1445_s22 = scalar_lea.vmem %s1444_s20, 64  ;;  %p1446_p11 = scmp.lt.s32.totalorder %s1641_s23, %s1444_s20 }
  0x25   : > { %p1441_p4 = pnand %p1439_p2, %p1425_p3  ;;  %p1447_p5 = scmp.lt.s32.totalorder %s1445_s22, %s1438_s16 }
  0x27   : > { %p1442_p12 = pneg %p1441_p4  ;;  %p1448_p8 = por %p1447_p5, %p1446_p11 }
  0x29   : > { %p1449_p9 = pnand %p1448_p8, %p1442_p12 }
  0x2b   : > { %1452 = shalt.err (!%p1449_p9)
}
  0x2c   : > { %1374 = dma.hbm_to_vmem [thread:$0]  (!%p1637_p13), %s1633_s21, 32, %s1641_s23, %s250_s25  }
  0x2d   : > { %p2292_p0 = scmp.lt.s32.totalorder %s1519_s29, 3  ;;  %p2293_p1 = scmp.ge.s32.totalorder %s1519_s29, 1 }
  0x2f   : > { %p267_p3 = pnand %p2293_p1, %p2292_p0 }
  0x30   : > { %s1675_s30 = sand.u32 (!%p267_p3), 1, %s1511_s27  }
  0x31   : > { %270 = sbr.rel (%p267_p3) target bundleno = 664 (0x298), region = 48  ;;  %s1302_s9 = sshll.u32 (!%p267_p3), %s1675_s30, 1 }
  0x32   : > { %s273_s10 = scalar_lea.sflag (!%p267_p3), [#allocation4], %s1675_s30  ;;  %s1681_s24 = scalar_lea.vmem (!%p267_p3), [#allocation3], %s1302_s9 }
  0x38   : > { %1498 = dma.done.wait (%p1613_p6), %s273_s10, 32  }
  0x39   : > { %1500 = vsyncadd (%p1613_p6), %s273_s10, 4294967264  ;;  %s1304_s21 = sshll.u32 %s1591_s6, 1  ;;  %v322_v0 = vlaneseq  ;;  %v1522_v1 = vmov 0.0   ;;  %v1523_v3 = vmov 0   ;;  %s1171_s10 = sld [smem:[#allocation2]] }
  0x3a   : > { %p313_p11 = scmp.lt.s32.totalorder %s1304_s21, 3  ;;  %811 = vmatprep.mubr.f32.mxu0 %v1522_v1  ;;  %982 = vmatprep.mubr.f32.mxu1 %v1522_v1  ;;  %s1199_s17 = scalar_lea.sflag [#allocation5], %s1675_s30 }
  0x3b   : > { %v1691_v2 = vshrl.u32 %v322_v0, 7  ;;  %1417 = vset.pattern.permute.xlu0 %v1523_v3  ;;  %1418 = vset.pattern.permute.xlu1 %v1523_v3  ;;  %p2294_p12 = scmp.ne.s32.totalorder %s2289_s14, 0 }
  0x3c   : > { %s2302_s21 = smov (!%p313_p11, %s1304_s21), 3 }
  0x3d   : > { %v1696_v4 = vsub.s32 0, %v1691_v2  ;;  %v1699_v5 = vsub.s32 1, %v1691_v2  ;;  %v418_v6 = vsub.s32 2, %v1691_v2  ;;  %s1305_s13 = sshll.u32 %s2302_s21, 3  ;;  %v468_v7 = vsub.s32 3, %v1691_v2  ;;  %s1334_s21 = sshll.u32 %s1591_s6, 5 }
  0x3e   : > { %v518_v8 = vsub.s32 4, %v1691_v2  ;;  %v568_v9 = vsub.s32 5, %v1691_v2  ;;  %v618_v10 = vsub.s32 6, %v1691_v2  ;;  %s1709_s12 = scalar_lea.vmem %s2278_s0, %s1305_s13  ;;  %v1712_v11 = vadd.s32 8, %v1691_v2  ;;  %s311_s13 = scalar_lea.vmem [#allocation6], %s1302_s9 }
  0x3f   : > { %v668_v12 = vsub.s32 7, %v1691_v2  ;;  %v1716_v13 = vadd.s32 16, %v1691_v2  ;;  %v1719_v14 = vld [vmem:[%s1709_s12 + $0x8] sm:$0xff]  ;;  %v1722_v15 = vadd.s32 24, %v1691_v2  ;;  %v1725_v16 = vadd.s32 32, %v1691_v2  ;;  %v1806_v43 = vld [vmem:[%s1709_s12] sm:$0xff]  ;;  %s2234_s12 = scalar_lea.hbm %s2285_s7, %s1334_s21 }
  0x40   : > { %v1728_v17 = vadd.s32 40, %v1691_v2  ;;  %v1731_v18 = vadd.s32 48, %v1691_v2  ;;  %v1735_v19 = vrot.slane %v1719_v14, %v1696_v4  ;;  %v1739_v20 = vrot.slane %v1719_v14, %v1699_v5  ;;  %s1213_s23 = sshll.u32 %s311_s13, 4  ;;  %s1526_s9 = smov [#allocation6]   ;;  %s2236_s23 = int_to_ptr.vmem [resolvable:$true] %s1213_s23 }
  0x41   : > { %v1744_v21 = vrot.slane %v1719_v14, %v418_v6  ;;  %v1749_v22 = vrot.slane %v1719_v14, %v468_v7  ;;  %v1754_v23 = vrot.slane %v1719_v14, %v518_v8  ;;  %v1759_v24 = vrot.slane %v1719_v14, %v568_v9  ;;  %s1453_s6 = scalar_lea.vmem %s2236_s23, 32  ;;  %s1457_s18 = sshll.u32 %s1526_s9, 4  ;;  %s1458_s18 = int_to_ptr.vmem [resolvable:$false] %s1457_s18 }
  0x42   : > { %v1764_v25 = vrot.slane %v1719_v14, %v618_v10  ;;  %v1769_v26 = vrot.slane %v1719_v14, %v668_v12  ;;  %vm339_vm0 = vcmp.eq.s32.totalorder %v1735_v19, %v1691_v2  ;;  %vm341_vm1 = vcmp.eq.s32.totalorder %v1735_v19, %v1712_v11  ;;  %p1454_p6 = scmp.ne.s32.totalorder %s2236_s23, %s1453_s6  ;;  %s1459_s16 = scalar_lea.vmem %s1458_s18, 64 }
  0x43   : > { %vm375_vm2 = vcmp.eq.s32.totalorder %v1739_v20, %v1691_v2  ;;  %vm377_vm3 = vcmp.eq.s32.totalorder %v1739_v20, %v1712_v11  ;;  %v353_v27 = vsel %vm339_vm0, 1, %v1523_v3  ;;  %v355_v28 = vsel %vm341_vm1, 1, %v1523_v3  ;;  %p1460_p10 = scmp.lt.s32.totalorder %s2236_s23, %s1458_s18  ;;  %p1461_p2 = scmp.lt.s32.totalorder %s1459_s16, %s1453_s6 }
  0x44   : > { %v389_v29 = vsel %vm375_vm2, 1, %v1523_v3  ;;  %v391_v30 = vsel %vm377_vm3, 1, %v1523_v3  ;;  %vm425_vm4 = vcmp.eq.s32.totalorder %v1744_v21, %v1691_v2  ;;  %vm427_vm5 = vcmp.eq.s32.totalorder %v1744_v21, %v1712_v11  ;;  %p1455_p13 = pnand %p1454_p6, %p2294_p12 }
  0x45   : > { %v403_v31 = vadd.s32 %v389_v29, %v353_v27  ;;  %v405_v32 = vadd.s32 %v391_v30, %v355_v28  ;;  %v439_v33 = vsel %vm425_vm4, 1, %v1523_v3  ;;  %v441_v34 = vsel %vm427_vm5, 1, %v1523_v3  ;;  %p1462_p4 = por %p1461_p2, %p1460_p10 }
  0x46   : > { %vm475_vm6 = vcmp.eq.s32.totalorder %v1749_v22, %v1691_v2  ;;  %vm477_vm7 = vcmp.eq.s32.totalorder %v1749_v22, %v1712_v11  ;;  %vm525_vm8 = vcmp.eq.s32.totalorder %v1754_v23, %v1691_v2  ;;  %vm527_vm9 = vcmp.eq.s32.totalorder %v1754_v23, %v1712_v11  ;;  %p1456_p7 = pneg %p1455_p13 }
  0x47   : > { %v453_v35 = vadd.s32 %v439_v33, %v403_v31  ;;  %v455_v36 = vadd.s32 %v441_v34, %v405_v32  ;;  %v489_v37 = vsel %vm475_vm6, 1, %v1523_v3  ;;  %v491_v38 = vsel %vm477_vm7, 1, %v1523_v3 }
  0x48   : > { %vm575_vm10 = vcmp.eq.s32.totalorder %v1759_v24, %v1691_v2  ;;  %vm577_vm11 = vcmp.eq.s32.totalorder %v1759_v24, %v1712_v11  ;;  %v539_v41 = vsel %vm525_vm8, 1, %v1523_v3  ;;  %v541_v42 = vsel %vm527_vm9, 1, %v1523_v3  ;;  %p1463_p5 = pnand %p1462_p4, %p1456_p7 }
  0x49   : > { %v503_v39 = vadd.s32 %v489_v37, %v453_v35  ;;  %v505_v40 = vadd.s32 %v491_v38, %v455_v36  ;;  %v589_v44 = vsel %vm575_vm10, 1, %v1523_v3  ;;  %v591_v45 = vsel %vm577_vm11, 1, %v1523_v3 }
  0x4a   : > { %vm625_vm12 = vcmp.eq.s32.totalorder %v1764_v25, %v1691_v2  ;;  %vm627_vm13 = vcmp.eq.s32.totalorder %v1764_v25, %v1712_v11  ;;  %vm675_vm14 = vcmp.eq.s32.totalorder %v1769_v26, %v1691_v2  ;;  %vm677_vm15 = vcmp.eq.s32.totalorder %v1769_v26, %v1712_v11 }
  0x4b   : > { %v553_v46 = vadd.s32 %v539_v41, %v503_v39  ;;  %v555_v47 = vadd.s32 %v541_v42, %v505_v40  ;;  %v639_v48 = vsel %vm625_vm12, 1, %v1523_v3  ;;  %v641_v49 = vsel %vm627_vm13, 1, %v1523_v3 }
  0x4c   : > { %v1822_v50 = vrot.slane %v1806_v43, %v1696_v4  ;;  %v1826_v51 = vrot.slane %v1806_v43, %v1699_v5  ;;  %v689_v54 = vsel %vm675_vm14, 1, %v1523_v3  ;;  %v691_v55 = vsel %vm677_vm15, 1, %v1523_v3 }
  0x4d   : > { %v603_v52 = vadd.s32 %v589_v44, %v553_v46  ;;  %v605_v53 = vadd.s32 %v591_v45, %v555_v47  ;;  %v1845_v62 = vrot.slane %v1806_v43, %v418_v6  ;;  %v1850_v63 = vrot.slane %v1806_v43, %v468_v7 }
  0x4e   : > { %vm338_vm0 = vcmp.eq.s32.totalorder %v1822_v50, %v1691_v2  ;;  %vm340_vm1 = vcmp.eq.s32.totalorder %v1822_v50, %v1712_v11  ;;  %vm374_vm2 = vcmp.eq.s32.totalorder %v1826_v51, %v1691_v2  ;;  %vm376_vm3 = vcmp.eq.s32.totalorder %v1826_v51, %v1712_v11 }
  0x4f   : > { %v653_v56 = vadd.s32 %v639_v48, %v603_v52  ;;  %v655_v57 = vadd.s32 %v641_v49, %v605_v53  ;;  %v352_v58 = vsel %vm338_vm0, 1, %v1523_v3  ;;  %v354_v59 = vsel %vm340_vm1, 1, %v1523_v3 }
  0x50   : > { %v388_v60 = vsel %vm374_vm2, 1, %v1523_v3  ;;  %v390_v61 = vsel %vm376_vm3, 1, %v1523_v3  ;;  %vm424_vm4 = vcmp.eq.s32.totalorder %v1845_v62, %v1691_v2  ;;  %vm426_vm5 = vcmp.eq.s32.totalorder %v1845_v62, %v1712_v11 }
  0x51   : > { %v703_v27 = vadd.s32 %v689_v54, %v653_v56  ;;  %v705_v28 = vadd.s32 %v691_v55, %v655_v57  ;;  %v402_v29 = vadd.s32 %v388_v60, %v352_v58  ;;  %v404_v30 = vadd.s32 %v390_v61, %v354_v59 }
  0x52   : > { %vm474_vm6 = vcmp.eq.s32.totalorder %v1850_v63, %v1691_v2  ;;  %vm476_vm7 = vcmp.eq.s32.totalorder %v1850_v63, %v1712_v11  ;;  %v438_v7 = vsel %vm424_vm4, 1, %v1523_v3  ;;  %v440_v32 = vsel %vm426_vm5, 1, %v1523_v3 }
  0x53   : > { %v717_v6 = vcvt.s32.f32 %v703_v27  ;;  %v719_v31 = vcvt.s32.f32 %v705_v28  ;;  %v452_v33 = vadd.s32 %v438_v7, %v402_v29  ;;  %v454_v34 = vadd.s32 %v440_v32, %v404_v30 }
  0x54   : > { %v488_v35 = vsel %vm474_vm6, 1, %v1523_v3  ;;  %v490_v36 = vsel %vm476_vm7, 1, %v1523_v3  ;;  %v1867_v38 = vrot.slane %v1806_v43, %v518_v8  ;;  %v1872_v39 = vrot.slane %v1806_v43, %v568_v9 }
  0x55   : > { %v1335_v37 = vpack.c.bf16 %v719_v31, %v717_v6  ;;  %v1877_v40 = vrot.slane %v1806_v43, %v618_v10  ;;  %v502_v41 = vadd.s32 %v488_v35, %v452_v33  ;;  %v504_v42 = vadd.s32 %v490_v36, %v454_v34 }
  0x56   : > { %v1882_v44 = vrot.slane %v1806_v43, %v668_v12  ;;  %vm343_vm8 = vcmp.eq.s32.totalorder %v1735_v19, %v1716_v13  ;;  %vm524_vm9 = vcmp.eq.s32.totalorder %v1867_v38, %v1691_v2  ;;  %vm526_vm10 = vcmp.eq.s32.totalorder %v1867_v38, %v1712_v11 }
  0x57   : > { %1336 = vmatprep.subr.bf16.mxu0 %v1335_v37  ;;  %vm574_vm11 = vcmp.eq.s32.totalorder %v1872_v39, %v1691_v2  ;;  %vm576_vm12 = vcmp.eq.s32.totalorder %v1872_v39, %v1712_v11  ;;  %v538_v8 = vsel %vm524_vm9, 1, %v1523_v3  ;;  %v540_v9 = vsel %vm526_vm10, 1, %v1523_v3 }
  0x58   : > { %v588_v10 = vsel %vm574_vm11, 1, %v1523_v3  ;;  %v590_v12 = vsel %vm576_vm12, 1, %v1523_v3  ;;  %v552_v45 = vadd.s32 %v538_v8, %v502_v41  ;;  %v554_v46 = vadd.s32 %v540_v9, %v504_v42 }
  0x59   : > { %vm624_vm13 = vcmp.eq.s32.totalorder %v1877_v40, %v1691_v2  ;;  %vm626_vm14 = vcmp.eq.s32.totalorder %v1877_v40, %v1712_v11  ;;  %vm674_vm15 = vcmp.eq.s32.totalorder %v1882_v44, %v1691_v2  ;;  %vm676_vm0 = vcmp.eq.s32.totalorder %v1882_v44, %v1712_v11 }
  0x5a   : > { %v638_v47 = vsel %vm624_vm13, 1, %v1523_v3  ;;  %v640_v48 = vsel %vm626_vm14, 1, %v1523_v3  ;;  %v602_v49 = vadd.s32 %v588_v10, %v552_v45  ;;  %v604_v52 = vadd.s32 %v590_v12, %v554_v46 }
  0x5b   : > { %v688_v53 = vsel %vm674_vm15, 1, %v1523_v3  ;;  %v690_v54 = vsel %vm676_vm0, 1, %v1523_v3  ;;  %vm345_vm1 = vcmp.eq.s32.totalorder %v1735_v19, %v1722_v15  ;;  %v357_v55 = vsel %vm343_vm8, 1, %v1523_v3 }
  0x5c   : > { %vm379_vm2 = vcmp.eq.s32.totalorder %v1739_v20, %v1716_v13  ;;  %vm381_vm3 = vcmp.eq.s32.totalorder %v1739_v20, %v1722_v15  ;;  %v652_v56 = vadd.s32 %v638_v47, %v602_v49  ;;  %v654_v57 = vadd.s32 %v640_v48, %v604_v52 }
  0x5d   : > { %v359_v58 = vsel %vm345_vm1, 1, %v1523_v3  ;;  %v393_v59 = vsel %vm379_vm2, 1, %v1523_v3  ;;  %v395_v60 = vsel %vm381_vm3, 1, %v1523_v3  ;;  %vm429_vm4 = vcmp.eq.s32.totalorder %v1744_v21, %v1716_v13 }
  0x5e   : > { %v407_v61 = vadd.s32 %v393_v59, %v357_v55  ;;  %vm431_vm5 = vcmp.eq.s32.totalorder %v1744_v21, %v1722_v15  ;;  %v702_v27 = vadd.s32 %v688_v53, %v652_v56  ;;  %v704_v28 = vadd.s32 %v690_v54, %v654_v57 }
  0x5f   : > { %v409_v29 = vadd.s32 %v395_v60, %v359_v58  ;;  %v443_v30 = vsel %vm429_vm4, 1, %v1523_v3  ;;  %v445_v6 = vsel %vm431_vm5, 1, %v1523_v3  ;;  %vm479_vm6 = vcmp.eq.s32.totalorder %v1749_v22, %v1716_v13 }
  0x60   : > { %v457_v31 = vadd.s32 %v443_v30, %v407_v61  ;;  %vm481_vm7 = vcmp.eq.s32.totalorder %v1749_v22, %v1722_v15  ;;  %v716_v7 = vcvt.s32.f32 %v702_v27  ;;  %v718_v32 = vcvt.s32.f32 %v704_v28 }
  0x61   : > { %v459_v33 = vadd.s32 %v445_v6, %v409_v29  ;;  %v493_v34 = vsel %vm479_vm6, 1, %v1523_v3  ;;  %v495_v35 = vsel %vm481_vm7, 1, %v1523_v3  ;;  %vm529_vm8 = vcmp.eq.s32.totalorder %v1754_v23, %v1716_v13 }
  0x62   : > { %v507_v36 = vadd.s32 %v493_v34, %v457_v31  ;;  %vm531_vm9 = vcmp.eq.s32.totalorder %v1754_v23, %v1722_v15  ;;  %v1337_v37 = vpack.c.bf16 %v718_v32, %v716_v7  ;;  %v543_v42 = vsel %vm529_vm8, 1, %v1523_v3 }
  0x63   : > { %v509_v41 = vadd.s32 %v495_v35, %v459_v33  ;;  %v545_v8 = vsel %vm531_vm9, 1, %v1523_v3  ;;  %vm579_vm10 = vcmp.eq.s32.totalorder %v1759_v24, %v1716_v13  ;;  %vm581_vm11 = vcmp.eq.s32.totalorder %v1759_v24, %v1722_v15 }
  0x64   : > { %v557_v9 = vadd.s32 %v543_v42, %v507_v36  ;;  %vm629_vm12 = vcmp.eq.s32.totalorder %v1764_v25, %v1716_v13  ;;  %1338 = vmatpush1.bf16.msra.mxu0 %v1337_v37  ;;  %v593_v12 = vsel %vm579_vm10, 1, %v1523_v3  ;;  %v595_v45 = vsel %vm581_vm11, 1, %v1523_v3 }
  0x65   : > { %v559_v10 = vadd.s32 %v545_v8, %v509_v41  ;;  %vm631_vm13 = vcmp.eq.s32.totalorder %v1764_v25, %v1722_v15  ;;  %v643_v47 = vsel %vm629_vm12, 1, %v1523_v3  ;;  %vm679_vm14 = vcmp.eq.s32.totalorder %v1769_v26, %v1716_v13 }
  0x66   : > { %v607_v46 = vadd.s32 %v593_v12, %v557_v9  ;;  %v645_v48 = vsel %vm631_vm13, 1, %v1523_v3  ;;  %vm681_vm15 = vcmp.eq.s32.totalorder %v1769_v26, %v1722_v15  ;;  %v693_v52 = vsel %vm679_vm14, 1, %v1523_v3 }
  0x67   : > { %v609_v49 = vadd.s32 %v595_v45, %v559_v10  ;;  %vm342_vm0 = vcmp.eq.s32.totalorder %v1822_v50, %v1716_v13  ;;  %v695_v54 = vsel %vm681_vm15, 1, %v1523_v3  ;;  %vm344_vm1 = vcmp.eq.s32.totalorder %v1822_v50, %v1722_v15 }
  0x68   : > { %v657_v53 = vadd.s32 %v643_v47, %v607_v46  ;;  %v356_v55 = vsel %vm342_vm0, 1, %v1523_v3  ;;  %v358_v57 = vsel %vm344_vm1, 1, %v1523_v3  ;;  %vm378_vm2 = vcmp.eq.s32.totalorder %v1826_v51, %v1716_v13 }
  0x69   : > { %v659_v56 = vadd.s32 %v645_v48, %v609_v49  ;;  %vm380_vm3 = vcmp.eq.s32.totalorder %v1826_v51, %v1722_v15  ;;  %v392_v59 = vsel %vm378_vm2, 1, %v1523_v3  ;;  %vm428_vm4 = vcmp.eq.s32.totalorder %v1845_v62, %v1716_v13 }
  0x6a   : > { %v707_v58 = vadd.s32 %v693_v52, %v657_v53  ;;  %v394_v60 = vsel %vm380_vm3, 1, %v1523_v3  ;;  %v406_v27 = vadd.s32 %v392_v59, %v356_v55  ;;  %vm430_vm5 = vcmp.eq.s32.totalorder %v1845_v62, %v1722_v15 }
  0x6b   : > { %v709_v61 = vadd.s32 %v695_v54, %v659_v56  ;;  %v408_v28 = vadd.s32 %v394_v60, %v358_v57  ;;  %v442_v30 = vsel %vm428_vm4, 1, %v1523_v3  ;;  %v444_v6 = vsel %vm430_vm5, 1, %v1523_v3 }
  0x6c   : > { %v721_v29 = vcvt.s32.f32 %v707_v58  ;;  %vm478_vm6 = vcmp.eq.s32.totalorder %v1850_v63, %v1716_v13  ;;  %v456_v7 = vadd.s32 %v442_v30, %v406_v27  ;;  %vm480_vm7 = vcmp.eq.s32.totalorder %v1850_v63, %v1722_v15 }
  0x6d   : > { %v723_v31 = vcvt.s32.f32 %v709_v61  ;;  %v458_v32 = vadd.s32 %v444_v6, %v408_v28  ;;  %v492_v33 = vsel %vm478_vm6, 1, %v1523_v3  ;;  %v494_v34 = vsel %vm480_vm7, 1, %v1523_v3 }
  0x6e   : > { %vm528_vm8 = vcmp.eq.s32.totalorder %v1867_v38, %v1716_v13  ;;  %vm530_vm9 = vcmp.eq.s32.totalorder %v1867_v38, %v1722_v15  ;;  %v506_v36 = vadd.s32 %v492_v33, %v456_v7  ;;  %vm578_vm10 = vcmp.eq.s32.totalorder %v1872_v39, %v1716_v13 }
  0x6f   : > { %v1339_v35 = vpack.c.bf16 %v723_v31, %v721_v29  ;;  %v508_v37 = vadd.s32 %v494_v34, %v458_v32  ;;  %v542_v41 = vsel %vm528_vm8, 1, %v1523_v3  ;;  %v544_v42 = vsel %vm530_vm9, 1, %v1523_v3 }
  0x70   : > { %vm580_vm11 = vcmp.eq.s32.totalorder %v1872_v39, %v1722_v15  ;;  %vm628_vm12 = vcmp.eq.s32.totalorder %v1877_v40, %v1716_v13  ;;  %v556_v8 = vadd.s32 %v542_v41, %v506_v36  ;;  %v592_v10 = vsel %vm578_vm10, 1, %v1523_v3 }
  0x71   : > { %1340 = vmatprep.subr.bf16.mxu0 %v1339_v35  ;;  %v558_v9 = vadd.s32 %v544_v42, %v508_v37  ;;  %v594_v12 = vsel %vm580_vm11, 1, %v1523_v3  ;;  %vm630_vm13 = vcmp.eq.s32.totalorder %v1877_v40, %v1722_v15  ;;  %v642_v45 = vsel %vm628_vm12, 1, %v1523_v3 }
  0x72   : > { %vm678_vm14 = vcmp.eq.s32.totalorder %v1882_v44, %v1716_v13  ;;  %vm680_vm15 = vcmp.eq.s32.totalorder %v1882_v44, %v1722_v15  ;;  %v606_v46 = vadd.s32 %v592_v10, %v556_v8  ;;  %v644_v48 = vsel %vm630_vm13, 1, %v1523_v3 }
  0x73   : > { %v608_v47 = vadd.s32 %v594_v12, %v558_v9  ;;  %v692_v49 = vsel %vm678_vm14, 1, %v1523_v3  ;;  %v694_v52 = vsel %vm680_vm15, 1, %v1523_v3  ;;  %vm347_vm0 = vcmp.eq.s32.totalorder %v1735_v19, %v1725_v16 }
  0x74   : > { %vm349_vm1 = vcmp.eq.s32.totalorder %v1735_v19, %v1728_v17  ;;  %vm383_vm2 = vcmp.eq.s32.totalorder %v1739_v20, %v1725_v16  ;;  %v656_v13 = vadd.s32 %v642_v45, %v606_v46  ;;  %v361_v15 = vsel %vm347_vm0, 1, %v1523_v3 }
  0x75   : > { %v658_v53 = vadd.s32 %v644_v48, %v608_v47  ;;  %v363_v54 = vsel %vm349_vm1, 1, %v1523_v3  ;;  %vm385_vm3 = vcmp.eq.s32.totalorder %v1739_v20, %v1728_v17  ;;  %v397_v55 = vsel %vm383_vm2, 1, %v1523_v3 }
  0x76   : > { %vm433_vm4 = vcmp.eq.s32.totalorder %v1744_v21, %v1725_v16  ;;  %vm435_vm5 = vcmp.eq.s32.totalorder %v1744_v21, %v1728_v17  ;;  %v706_v56 = vadd.s32 %v692_v49, %v656_v13  ;;  %v399_v58 = vsel %vm385_vm3, 1, %v1523_v3 }
  0x77   : > { %v708_v57 = vadd.s32 %v694_v52, %v658_v53  ;;  %v411_v59 = vadd.s32 %v397_v55, %v361_v15  ;;  %v413_v60 = vadd.s32 %v399_v58, %v363_v54  ;;  %v447_v61 = vsel %vm433_vm4, 1, %v1523_v3 }
  0x78   : > { %v449_v27 = vsel %vm435_vm5, 1, %v1523_v3  ;;  %vm483_vm6 = vcmp.eq.s32.totalorder %v1749_v22, %v1725_v16  ;;  %v720_v28 = vcvt.s32.f32 %v706_v56  ;;  %vm485_vm7 = vcmp.eq.s32.totalorder %v1749_v22, %v1728_v17 }
  0x79   : > { %v722_v29 = vcvt.s32.f32 %v708_v57  ;;  %v461_v30 = vadd.s32 %v447_v61, %v411_v59  ;;  %v463_v6 = vadd.s32 %v449_v27, %v413_v60  ;;  %v497_v31 = vsel %vm483_vm6, 1, %v1523_v3 }
  0x7a   : > { %v499_v7 = vsel %vm485_vm7, 1, %v1523_v3  ;;  %vm533_vm8 = vcmp.eq.s32.totalorder %v1754_v23, %v1725_v16  ;;  %vm535_vm9 = vcmp.eq.s32.totalorder %v1754_v23, %v1728_v17  ;;  %vm583_vm10 = vcmp.eq.s32.totalorder %v1759_v24, %v1725_v16 }
  0x7b   : > { %v1341_v32 = vpack.c.bf16 %v722_v29, %v720_v28  ;;  %v511_v33 = vadd.s32 %v497_v31, %v461_v30  ;;  %v547_v34 = vsel %vm533_vm8, 1, %v1523_v3  ;;  %v513_v35 = vadd.s32 %v499_v7, %v463_v6 }
  0x7c   : > { %v549_v36 = vsel %vm535_vm9, 1, %v1523_v3  ;;  %vm585_vm11 = vcmp.eq.s32.totalorder %v1759_v24, %v1728_v17  ;;  %v597_v41 = vsel %vm583_vm10, 1, %v1523_v3  ;;  %vm633_vm12 = vcmp.eq.s32.totalorder %v1764_v25, %v1725_v16 }
  0x7d   : > { %1342 = vmatpush1.bf16.msra.mxu0 %v1341_v32  ;;  %v561_v37 = vadd.s32 %v547_v34, %v511_v33  ;;  %v599_v42 = vsel %vm585_vm11, 1, %v1523_v3  ;;  %v563_v8 = vadd.s32 %v549_v36, %v513_v35  ;;  %vm635_vm13 = vcmp.eq.s32.totalorder %v1764_v25, %v1728_v17 }
  0x7e   : > { %v647_v9 = vsel %vm633_vm12, 1, %v1523_v3  ;;  %vm683_vm14 = vcmp.eq.s32.totalorder %v1769_v26, %v1725_v16  ;;  %v649_v12 = vsel %vm635_vm13, 1, %v1523_v3  ;;  %vm685_vm15 = vcmp.eq.s32.totalorder %v1769_v26, %v1728_v17 }
  0x7f   : > { %v611_v10 = vadd.s32 %v597_v41, %v561_v37  ;;  %v697_v45 = vsel %vm683_vm14, 1, %v1523_v3  ;;  %v613_v46 = vadd.s32 %v599_v42, %v563_v8  ;;  %v699_v47 = vsel %vm685_vm15, 1, %v1523_v3 }
  0x80   : > { %vm346_vm0 = vcmp.eq.s32.totalorder %v1822_v50, %v1725_v16  ;;  %vm348_vm1 = vcmp.eq.s32.totalorder %v1822_v50, %v1728_v17  ;;  %vm382_vm2 = vcmp.eq.s32.totalorder %v1826_v51, %v1725_v16  ;;  %vm384_vm3 = vcmp.eq.s32.totalorder %v1826_v51, %v1728_v17 }
  0x81   : > { %v661_v48 = vadd.s32 %v647_v9, %v611_v10  ;;  %v360_v49 = vsel %vm346_vm0, 1, %v1523_v3  ;;  %v362_v52 = vsel %vm348_vm1, 1, %v1523_v3  ;;  %v663_v13 = vadd.s32 %v649_v12, %v613_v46 }
  0x82   : > { %v396_v53 = vsel %vm382_vm2, 1, %v1523_v3  ;;  %vm432_vm4 = vcmp.eq.s32.totalorder %v1845_v62, %v1725_v16  ;;  %v398_v54 = vsel %vm384_vm3, 1, %v1523_v3  ;;  %vm434_vm5 = vcmp.eq.s32.totalorder %v1845_v62, %v1728_v17 }
  0x83   : > { %v711_v15 = vadd.s32 %v697_v45, %v661_v48  ;;  %v410_v55 = vadd.s32 %v396_v53, %v360_v49  ;;  %v713_v56 = vadd.s32 %v699_v47, %v663_v13  ;;  %v412_v57 = vadd.s32 %v398_v54, %v362_v52 }
  0x84   : > { %v446_v58 = vsel %vm432_vm4, 1, %v1523_v3  ;;  %v448_v59 = vsel %vm434_vm5, 1, %v1523_v3  ;;  %vm482_vm6 = vcmp.eq.s32.totalorder %v1850_v63, %v1725_v16  ;;  %vm484_vm7 = vcmp.eq.s32.totalorder %v1850_v63, %v1728_v17 }
  0x85   : > { %v725_v60 = vcvt.s32.f32 %v711_v15  ;;  %v460_v61 = vadd.s32 %v446_v58, %v410_v55  ;;  %v727_v27 = vcvt.s32.f32 %v713_v56  ;;  %v462_v28 = vadd.s32 %v448_v59, %v412_v57 }
  0x86   : > { %v496_v29 = vsel %vm482_vm6, 1, %v1523_v3  ;;  %v498_v30 = vsel %vm484_vm7, 1, %v1523_v3  ;;  %vm532_vm8 = vcmp.eq.s32.totalorder %v1867_v38, %v1725_v16  ;;  %vm534_vm9 = vcmp.eq.s32.totalorder %v1867_v38, %v1728_v17 }
  0x87   : > { %v510_v6 = vadd.s32 %v496_v29, %v460_v61  ;;  %vm582_vm10 = vcmp.eq.s32.totalorder %v1872_v39, %v1725_v16  ;;  %v1343_v31 = vpack.c.bf16 %v727_v27, %v725_v60  ;;  %v512_v7 = vadd.s32 %v498_v30, %v462_v28 }
  0x88   : > { %v546_v32 = vsel %vm532_vm8, 1, %v1523_v3  ;;  %v548_v33 = vsel %vm534_vm9, 1, %v1523_v3  ;;  %vm584_vm11 = vcmp.eq.s32.totalorder %v1872_v39, %v1728_v17  ;;  %v596_v35 = vsel %vm582_vm10, 1, %v1523_v3 }
  0x89   : > { %v560_v34 = vadd.s32 %v546_v32, %v510_v6  ;;  %vm632_vm12 = vcmp.eq.s32.totalorder %v1877_v40, %v1725_v16  ;;  %1344 = vmatprep.subr.bf16.mxu0 %v1343_v31  ;;  %v562_v36 = vadd.s32 %v548_v33, %v512_v7  ;;  %v598_v37 = vsel %vm584_vm11, 1, %v1523_v3  ;;  %v880_v7 = vld [vmem:[%s1681_s24] sm:$0x3] }
  0x8a   : > { %vm634_vm13 = vcmp.eq.s32.totalorder %v1877_v40, %v1728_v17  ;;  %v646_v41 = vsel %vm632_vm12, 1, %v1523_v3  ;;  %vm682_vm14 = vcmp.eq.s32.totalorder %v1882_v44, %v1725_v16  ;;  %vm684_vm15 = vcmp.eq.s32.totalorder %v1882_v44, %v1728_v17 }
  0x8b   : > { %v610_v42 = vadd.s32 %v596_v35, %v560_v34  ;;  %v648_v8 = vsel %vm634_vm13, 1, %v1523_v3  ;;  %v612_v9 = vadd.s32 %v598_v37, %v562_v36  ;;  %v696_v10 = vsel %vm682_vm14, 1, %v1523_v3  ;;  %v901_v35 = vld [vmem:[%s2281_s3] sm:$0xff]  ;;  %v1123_v37 = vld [vmem:[%s2283_s5 + $0x10] sm:$0xff] }
  0x8c   : > { %v698_v12 = vsel %vm684_vm15, 1, %v1523_v3  ;;  %vm351_vm0 = vcmp.eq.s32.totalorder %v1735_v19, %v1731_v18  ;;  %vm387_vm1 = vcmp.eq.s32.totalorder %v1739_v20, %v1731_v18  ;;  %vm437_vm2 = vcmp.eq.s32.totalorder %v1744_v21, %v1731_v18  ;;  %v1121_v36 = vld [vmem:[%s2283_s5] sm:$0xff]  ;;  %1137 = vperm.xlu1 %1418, %v1123_v37  }
  0x8d   : > { %v660_v45 = vadd.s32 %v646_v41, %v610_v42  ;;  %v365_v46 = vsel %vm351_vm0, 1, %v1523_v3  ;;  %v662_v16 = vadd.s32 %v648_v8, %v612_v9  ;;  %v401_v17 = vsel %vm387_vm1, 1, %v1523_v3  ;;  %1127 = vperm.xlu0 %1417, %v1121_v36   ;;  %v1122_v41 = vld [vmem:[%s2283_s5 + $0x8] sm:$0xff]  ;;  %v1124_v42 = vld [vmem:[%s2283_s5 + $0x18] sm:$0xff] }
  0x8e   : > { %v451_v47 = vsel %vm437_vm2, 1, %v1523_v3  ;;  %vm487_vm3 = vcmp.eq.s32.totalorder %v1749_v22, %v1731_v18  ;;  %v415_v49 = vadd.s32 %v401_v17, %v365_v46  ;;  %vm537_vm4 = vcmp.eq.s32.totalorder %v1754_v23, %v1731_v18 }
  0x8f   : > { %v710_v48 = vadd.s32 %v696_v10, %v660_v45  ;;  %v712_v19 = vadd.s32 %v698_v12, %v662_v16  ;;  %v501_v52 = vsel %vm487_vm3, 1, %v1523_v3  ;;  %vm587_vm5 = vcmp.eq.s32.totalorder %v1759_v24, %v1731_v18 }
  0x90   : > { %v465_v21 = vadd.s32 %v451_v47, %v415_v49  ;;  %v551_v13 = vsel %vm537_vm4, 1, %v1523_v3  ;;  %vm637_vm6 = vcmp.eq.s32.totalorder %v1764_v25, %v1731_v18  ;;  %v601_v22 = vsel %vm587_vm5, 1, %v1523_v3  ;;  %1142 = vperm.xlu1 %1418, %v1124_v42  }
  0x91   : > { %v724_v20 = vcvt.s32.f32 %v710_v48  ;;  %v726_v53 = vcvt.s32.f32 %v712_v19  ;;  %vm350_vm7 = vcmp.eq.s32.totalorder %v1822_v50, %v1731_v18  ;;  %vm386_vm8 = vcmp.eq.s32.totalorder %v1826_v51, %v1731_v18  ;;  %1132 = vperm.xlu0 %1417, %v1122_v41  }
  0x92   : > { %v515_v23 = vadd.s32 %v501_v52, %v465_v21  ;;  %vm687_vm9 = vcmp.eq.s32.totalorder %v1769_v26, %v1731_v18  ;;  %v364_v24 = vsel %vm350_vm7, 1, %v1523_v3  ;;  %v400_v15 = vsel %vm386_vm8, 1, %v1523_v3 }
  0x93   : > { %v1345_v54 = vpack.c.bf16 %v726_v53, %v724_v20  ;;  %v414_v55 = vadd.s32 %v400_v15, %v364_v24  ;;  %vm436_vm10 = vcmp.eq.s32.totalorder %v1845_v62, %v1731_v18  ;;  %vm486_vm11 = vcmp.eq.s32.totalorder %v1850_v63, %v1731_v18 }
  0x94   : > { %v565_v50 = vadd.s32 %v551_v13, %v515_v23  ;;  %v450_v56 = vsel %vm436_vm10, 1, %v1523_v3  ;;  %v500_v51 = vsel %vm486_vm11, 1, %v1523_v3  ;;  %vm536_vm12 = vcmp.eq.s32.totalorder %v1867_v38, %v1731_v18 }
  0x95   : > { %1346 = vmatpush1.bf16.msra.mxu0 %v1345_v54  ;;  %v651_v57 = vsel %vm637_vm6, 1, %v1523_v3  ;;  %v464_v58 = vadd.s32 %v450_v56, %v414_v55  ;;  %vm586_vm13 = vcmp.eq.s32.totalorder %v1872_v39, %v1731_v18  ;;  %v550_v63 = vsel %vm536_vm12, 1, %v1523_v3 }
  0x96   : > { %v615_v62 = vadd.s32 %v601_v22, %v565_v50  ;;  %v701_v59 = vsel %vm687_vm9, 1, %v1523_v3  ;;  %vm636_vm14 = vcmp.eq.s32.totalorder %v1877_v40, %v1731_v18  ;;  %v600_v25 = vsel %vm586_vm13, 1, %v1523_v3  ;;  %v730_v40 = vld [vmem:[%s2280_s2] sm:$0xff] }
  0x97   : > { %v514_v60 = vadd.s32 %v500_v51, %v464_v58  ;;  %vm686_vm15 = vcmp.eq.s32.totalorder %v1882_v44, %v1731_v18  ;;  %v650_v27 = vsel %vm636_vm14, 1, %v1523_v3  ;;  %vm734_vm0 = vcmask 457728   ;;  %v731_v18 = vld [vmem:[%s2280_s2 + $0x8] sm:$0xff]  ;;  %v733_v44 = vld [vmem:[%s2280_s2 + $0x18] sm:$0xff] }
  0x98   : > { %v665_v38 = vadd.s32 %v651_v57, %v615_v62  ;;  %v700_v30 = vsel %vm686_vm15, 1, %v1523_v3  ;;  %v732_v3 = vld [vmem:[%s2280_s2 + $0x10] sm:$0xff]  ;;  %v888_v32 = vrot.slane %v880_v7, %v1699_v5  ;;  %v884_v33 = vrot.slane %v880_v7, %v1696_v4  ;;  %v902_v4 = vld [vmem:[%s2281_s3 + $0x8] sm:$0xff] }
  0x99   : > { %v564_v61 = vadd.s32 %v550_v63, %v514_v60  ;;  %v1524_v34 = vmov 1.0|1.0   ;;  %vm905_vm7 = vcmask 130048   ;;  %v903_v5 = vld [vmem:[%s2281_s3 + $0x10] sm:$0xff]  ;;  %vm836_vm8 = vcmp.ne.s32.totalorder %v1806_v43, 0  ;;  %v1008_v7 = vld [vmem:[%s2282_s4 + $0x8] sm:$0xff] }
  0x9a   : > { %v715_v39 = vadd.s32 %v701_v59, %v665_v38  ;;  %vm890_vm1 = vcmp.eq.s32.totalorder %v888_v32, %v1691_v2  ;;  %vm892_vm2 = vcmp.eq.s32.totalorder %v888_v32, %v1712_v11  ;;  %vm889_vm4 = vcmp.eq.s32.totalorder %v884_v33, %v1691_v2  ;;  %v1009_v32 = vld [vmem:[%s2282_s4 + $0x10] sm:$0xff] }
  0x9b   : > { %v614_v28 = vadd.s32 %v600_v25, %v564_v61  ;;  %vm1347_vm3 = vmpackc.low %vm892_vm2, %vm890_vm1  ;;  %vm891_vm5 = vcmp.eq.s32.totalorder %v884_v33, %v1712_v11  ;;  %v904_v11 = vld [vmem:[%s2281_s3 + $0x18] sm:$0xff]  ;;  %vm837_vm9 = vcmp.ne.s32.totalorder %v1719_v14, 0  ;;  %v1310_v8 = vsel %vm836_vm8, 1.0, %v1522_v1 }
  0x9c   : > { %v729_v29 = vcvt.s32.f32 %v715_v39  ;;  %1348 = vmatprep.subr.msk.bf16.mxu1 %vm1347_vm3, %v1524_v34  ;;  %vm1349_vm6 = vmpackc.low %vm891_vm5, %vm889_vm4  ;;  %v1311_v9 = vsel %vm837_vm9, 1.0, %v1522_v1  ;;  %v842_v10 = vrot.slane %v1310_v8, 4  ;;  %vm1011_vm12 = vcmask 261120   ;;  %v1010_v33 = vld [vmem:[%s2282_s4 + $0x18] sm:$0xff] }
  0x9d   : > { %v664_v26 = vadd.s32 %v650_v27, %v614_v28  ;;  %1350 = vmatpush1.bf16.msk.msra.mxu1 %vm1349_vm6, %v1524_v34  ;;  %v848_v12 = vrot.slane %v1311_v9, 4  ;;  %vm1195_vm13 = vcmp.lt.s32.totalorder %v322_v0, 256 }
  0x9e   : > { %759 = vmatprep.subr.mxu0 %v729_v29  ;;  %v843_v45 = vadd.f32 %v1310_v8, %v842_v10 }
  0x9f   : > { %v714_v6 = vadd.s32 %v700_v30, %v664_v26  ;;  %v849_v46 = vadd.f32 %v1311_v9, %v848_v12 }
  0xa0   : > { %1320 = vmatmul.mubr.msk.f32.vlgmr.msra.gmra.mrb[0].mxu1 %vm905_vm7, %v901_v35  ;;  %v844_v16 = vrot.slane %v843_v45, 2 }
  0xa1   : > { %v728_v31 = vcvt.s32.f32 %v714_v6  ;;  %988 = vmatprep.mubr.f32.mxu1 %v1522_v1  ;;  %v850_v17 = vrot.slane %v849_v46, 2 }
  0xa2   : > { %v845_v47 = vadd.f32 %v844_v16, %v843_v45 }
  0xa3   : > { %760 = vmatpush1.msra.mxu0 %v728_v31  ;;  %v851_v48 = vadd.f32 %v850_v17, %v849_v46 }
  0xa4   : > { %1306 = vmatmul.mubr.msk.f32.vlgmr.msra.gmra.mrb[0].mxu0 %vm734_vm0, %v730_v40  ;;  %1321 = vmatmul.mubr.msk.f32.gmra.mrb[2].mxu1 %vm905_vm7, %v902_v4  ;;  %v846_v49 = vrot.slane %v845_v47, 1 }
  0xa5   : > { %817 = vmatprep.mubr.f32.mxu0 %v1522_v1  ;;  %994 = vmatprep.mubr.f32.mxu1 %v1522_v1  ;;  %v852_v19 = vrot.slane %v851_v48, 1 }
  0xa6   : > { %v847_v52 = vadd.f32 %v846_v49, %v845_v47 }
  0xa7   : > { %v853_v20 = vadd.f32 %v852_v19, %v851_v48 }
  0xa8   : > { %1307 = vmatmul.mubr.msk.f32.gmra.mrb[2].mxu0 %vm734_vm0, %v731_v18  ;;  %1322 = vmatmul.mubr.msk.f32.gmra.mrb[4].mxu1 %vm905_vm7, %v903_v5  ;;  %v854_v21 = vadd.f32 1e-08, %v847_v52 }
  0xa9   : > { %823 = vmatprep.mubr.f32.mxu0 %v1522_v1  ;;  %1000 = vmatprep.mubr.f32.mxu1 %v1522_v1  ;;  %v855_v43 = vadd.f32 1e-08, %v853_v20 }
  0xaa   : > { %1419 = vrcp.f32 %v854_v21 }
  0xab   : > { %1421 = vrcp.f32 %v855_v43 }
  0xac   : > { %1308 = vmatmul.mubr.msk.f32.gmra.mrb[4].mxu0 %vm734_vm0, %v732_v3  ;;  %1323 = vmatmul.mubr.msk.f32.gmra.mrb[6].mxu1 %vm905_vm7, %v904_v11 }
  0xad   : > { %829 = vmatprep.mubr.f32.mxu0 %v1522_v1  ;;  %1088 = vmatprep.mubr.f32.mxu1 %v1522_v1 }
  0xb0   : > { %1309 = vmatmul.mubr.msk.f32.gmra.mrb[6].mxu0 %vm734_vm0, %v733_v44  ;;  %v1007_v44 = vld [vmem:[%s2282_s4] sm:$0xff] }
  0xb4   : > { %v1420_v14 = vpop.eup %1419 }
  0xb5   : > { %v1422_v13 = vpop.eup %1421  ;;  %vm860_vm10 = vcmp.ge.f32.partialorder %v1420_v14, 1e+08 }
  0xb6   : > { %vm861_vm11 = vcmp.ge.f32.partialorder %v1422_v13, 1e+08  ;;  %v862_v22 = vsel %vm860_vm10, 0.0, %v1420_v14 }
  0xb7   : > { %v863_v24 = vsel %vm861_vm11, 0.0, %v1422_v13 }
 0x10b   : > { %v1138_v46 = vpop.permute.xlu1 %1137 }
 0x10c   : > { %v1128_v34 = vpop.permute.xlu0 %1127 }
 0x110   : > { %v1133_v37 = vpop.permute.xlu0 %1132 }
 0x177   : > { %v813_v53 = vpop.f32.mrb[0].mxu0 }
 0x178   : > { %v815_v23 = vpop.f32.mrb[1].mxu0  ;;  %v864_v15 = vmul.f32 %v862_v22, %v813_v53 }
 0x179   : > { %v865_v54 = vmul.f32 %v863_v24, %v815_v23 }
 0x17a   : > { %v872_v57 = vmax.f32 %v864_v15, 0.0 }
 0x17b   : > { %v819_v55 = vpop.f32.mrb[2].mxu0  ;;  %v873_v62 = vmax.f32 %v865_v54, 0.0 }
 0x17c   : > { %v866_v50 = vmul.f32 %v862_v22, %v819_v55  ;;  %v821_v56 = vpop.f32.mrb[3].mxu0 }
 0x17d   : > { %v867_v51 = vmul.f32 %v863_v24, %v821_v56 }
 0x17e   : > { %v874_v58 = vmax.f32 %v866_v50, 0.0 }
 0x17f   : > { %v875_v63 = vmax.f32 %v867_v51, 0.0  ;;  %v825_v59 = vpop.f32.mrb[4].mxu0 }
 0x180   : > { %v1353_v60 = vpack.c.bf16 %v874_v58, %v872_v57  ;;  %v827_v38 = vpop.f32.mrb[5].mxu0  ;;  %v868_v61 = vmul.f32 %v862_v22, %v825_v59  ;;  %v1525_v58 = vmov 1966171168  }
 0x181   : > { %v1351_v25 = vpack.c.bf16 %v875_v63, %v873_v62  ;;  %v869_v39 = vmul.f32 %v863_v24, %v827_v38  ;;  %v1179_v62 = vunpack.c.l.s4 %v1525_v58 }
 0x182   : > { %v876_v26 = vmax.f32 %v868_v61, 0.0 }
 0x183   : > { %v831_v27 = vpop.f32.mrb[6].mxu0  ;;  %1352 = vmatprep.subr.bf16.mxu1 %v1351_v25  ;;  %v877_v31 = vmax.f32 %v869_v39, 0.0  ;;  %v1172_v25 = vstv %s1171_s10  ;;  %v1180_v61 = vunpack.c.0.s8 %v1179_v62 }
 0x184   : > { %v870_v28 = vmul.f32 %v862_v22, %v831_v27  ;;  %v833_v29 = vpop.f32.mrb[7].mxu0  ;;  %1354 = vmatpush1.bf16.msra.mxu1 %v1353_v60  ;;  %v1143_v22 = vpop.permute.xlu1 %1142 }
 0x185   : > { %v871_v30 = vmul.f32 %v863_v24, %v833_v29 }
 0x186   : > { %v878_v6 = vmax.f32 %v870_v28, 0.0 }
 0x187   : > { %v879_v40 = vmax.f32 %v871_v30, 0.0  ;;  %v1183_v30 = vsub.s32 %v1180_v61, %v1691_v2 }
 0x188   : > { %v1357_v18 = vpack.c.bf16 %v878_v6, %v876_v26 }
 0x189   : > { %v1355_v3 = vpack.c.bf16 %v879_v40, %v877_v31 }
 0x18b   : > { %1356 = vmatprep.subr.bf16.mxu1 %v1355_v3 }
 0x18c   : > { %1358 = vmatpush1.bf16.msra.mxu1 %v1357_v18 }
 0x18f   : > { %1324 = vmatmul.mubr.msk.f32.vlgmr.msra.gmra.mrb[0].mxu1 %vm1011_vm12, %v1007_v44 }
 0x190   : > { %1094 = vmatprep.mubr.f32.mxu1 %v1522_v1 }
 0x193   : > { %1325 = vmatmul.mubr.msk.f32.gmra.mrb[2].mxu1 %vm1011_vm12, %v1008_v7 }
 0x194   : > { %1100 = vmatprep.mubr.f32.mxu1 %v1522_v1 }
 0x197   : > { %1326 = vmatmul.mubr.msk.f32.gmra.mrb[4].mxu1 %vm1011_vm12, %v1009_v32 }
 0x198   : > { %1106 = vmatprep.mubr.f32.mxu1 %v1522_v1 }
 0x19b   : > { %1327 = vmatmul.mubr.msk.f32.gmra.mrb[6].mxu1 %vm1011_vm12, %v1010_v33 }
 0x262   : > { %v1090_v35 = vpop.f32.mrb[0].mxu1 }
 0x263   : > { %v1092_v4 = vpop.f32.mrb[1].mxu1  ;;  %v1113_v5 = vmax.f32 %v1090_v35, 0.0 }
 0x264   : > { %v1114_v11 = vmax.f32 %v1092_v4, 0.0 }
 0x265   : > { %v1145_v9 = vmul.f32 %v1128_v34, %v1113_v5 }
 0x266   : > { %v1096_v36 = vpop.f32.mrb[2].mxu1  ;;  %v1146_v12 = vmul.f32 %v1128_v34, %v1114_v11 }
 0x267   : > { %v1115_v41 = vmax.f32 %v1096_v36, 0.0  ;;  %v1098_v42 = vpop.f32.mrb[3].mxu1 }
 0x268   : > { %v1116_v8 = vmax.f32 %v1098_v42, 0.0 }
 0x269   : > { %v1147_v10 = vmul.f32 %v1133_v37, %v1115_v41 }
 0x26a   : > { %v1148_v45 = vmul.f32 %v1133_v37, %v1116_v8  ;;  %v1102_v1 = vpop.f32.mrb[4].mxu1 }
 0x26b   : > { %v1153_v16 = vadd.f32 %v1147_v10, %v1145_v9  ;;  %v1117_v17 = vmax.f32 %v1102_v1, 0.0  ;;  %v1104_v47 = vpop.f32.mrb[5].mxu1 }
 0x26c   : > { %v1162_v48 = vadd.f32 %v1148_v45, %v1146_v12  ;;  %v1118_v49 = vmax.f32 %v1104_v47, 0.0 }
 0x26d   : > { %v1149_v19 = vmul.f32 %v1138_v46, %v1117_v17 }
 0x26e   : > { %v1150_v52 = vmul.f32 %v1138_v46, %v1118_v49  ;;  %v1108_v20 = vpop.f32.mrb[6].mxu1 }
 0x26f   : > { %v1154_v21 = vadd.f32 %v1153_v16, %v1149_v19  ;;  %v1119_v43 = vmax.f32 %v1108_v20, 0.0  ;;  %v1110_v14 = vpop.f32.mrb[7].mxu1 }
 0x270   : > { %v1163_v13 = vadd.f32 %v1162_v48, %v1150_v52  ;;  %v1120_v53 = vmax.f32 %v1110_v14, 0.0 }
 0x271   : > { %v1151_v23 = vmul.f32 %v1143_v22, %v1119_v43 }
 0x272   : > { %v1152_v24 = vmul.f32 %v1143_v22, %v1120_v53 }
 0x273   : > { %v1155_v15 = vadd.f32 %v1154_v21, %v1151_v23 }
 0x274   : > { %v1164_v54 = vadd.f32 %v1163_v13, %v1152_v24 }
 0x275   : > { %v1156_v55 = vrot.slane %v1155_v15, 4 }
 0x276   : > { %v1165_v50 = vrot.slane %v1164_v54, 4 }
 0x277   : > { %v1157_v56 = vadd.f32 %v1156_v55, %v1155_v15 }
 0x278   : > { %v1166_v51 = vadd.f32 %v1165_v50, %v1164_v54 }
 0x279   : > { %v1158_v57 = vrot.slane %v1157_v56, 2 }
 0x27a   : > { %v1167_v63 = vrot.slane %v1166_v51, 2 }
 0x27b   : > { %v1159_v59 = vadd.f32 %v1158_v57, %v1157_v56 }
 0x27c   : > { %v1168_v60 = vadd.f32 %v1167_v63, %v1166_v51 }
 0x27d   : > { %v1160_v38 = vrot.slane %v1159_v59, 1 }
 0x27e   : > { %v1169_v39 = vrot.slane %v1168_v60, 1 }
 0x27f   : > { %v1161_v27 = vadd.f32 %v1160_v38, %v1159_v59 }
 0x280   : > { %v1170_v28 = vadd.f32 %v1169_v39, %v1168_v60 }
 0x281   : > { %v1173_v29 = vadd.f32 %v1172_v25, %v1161_v27 }
 0x282   : > { %v1174_v26 = vadd.f32 %v1172_v25, %v1170_v28 }
 0x284   : > { %v1177_v6 = vcombine.low %v1173_v29, %v1174_v26 }
 0x286   : > { %v1184_v31 = vrot.slane %v1177_v6, %v1183_v30 }
 0x288   : > { %v1191_v40 = vrot.slane %v1184_v31, %v1183_v30 }
 0x28a   : > { %1197 = vst.msk [vmem:[%s311_s13] sm:$0x3] %vm1195_vm13, %v1191_v40 }
 0x28b   : > { %1466 = shalt.err (!%p1463_p5)
}
 0x28c   : > { %s1467_s30 = scalar_lea.hbm %s2234_s12, 32  ;;  %s1471_s22 = scalar_lea.hbm %s2285_s7, 64 }
 0x28d   : > { %p1468_p8 = scmp.ne.s32.totalorder %s2234_s12, %s1467_s30  ;;  %p1472_p1 = scmp.lt.u32.totalorder %s2234_s12, %s2285_s7 }
 0x28e   : > { %p1473_p3 = scmp.lt.u32.totalorder %s1471_s22, %s1467_s30  ;;  %p1475_p6 = scmp.lt.u32.totalorder %s1467_s30, %s2234_s12 }
 0x28f   : > { %p1469_p9 = pnand %p1468_p8, %p2294_p12 }
 0x290   : > { %p1474_p11 = por %p1473_p3, %p1472_p1 }
 0x291   : > { %p1470_p0 = pneg %p1469_p9 }
 0x292   : > { %p1476_p13 = por %p1475_p6, %p1474_p11 }
 0x294   : > { %p1477_p7 = pnand %p1476_p13, %p1470_p0 }
 0x296   : > { %1480 = shalt.err (!%p1477_p7)
}
 0x297   : > { %1369 = dma.vmem_to_hbm [thread:$0]  (%p2294_p12), %s2236_s23, 32, %s2234_s12, %s1199_s17  }
 0x298 PF: > { %s1225_s13 = sand.u32 1, %s1507_s26   ;;  %p2295_p10 = scmp.ne.s32.totalorder %s2290_s15, 0 }
 0x299   : > { %p2296_p2 = scmp.ge.s32.totalorder %s1519_s29, 2  ;;  %s1226_s24 = scalar_lea.sflag [#allocation5], %s1225_s13 }
 0x29b   : > { %p1376_p4 = pnand %p2296_p2, %p2295_p10 }
 0x29d   : > { %1502 = dma.done.wait (!%p1376_p4), %s1226_s24, 32  }
 0x29e   : > { %1504 = vsyncadd (!%p1376_p4), %s1226_s24, 4294967264  ;;  %p21_p5 = scmp.ge.s32.totalorder %s1595_s8, 4   ;;  %s2297_s26 = smov %s1511_s27 }
 0x29f   : > { %s2298_s27 = smov %s1515_s28  ;;  %s2299_s28 = smov %s1607_s11 }
 0x2a0   : > { %s2300_s29 = smov %s1595_s8  ;;  %23 = sbr.rel (!%p21_p5) target bundleno = 7 (0x7), region = 96 }
 0x2a7   :  { %1231 = vsyncpa [#allocation4], 1 }
 0x2a8   :  { %1233 = vsyncpa [#allocation4 + $0x1], 1 }
 0x2a9   :  { %1234 = vsyncpa [#allocation5], 1 }
 0x2aa   :  { %1236 = vsyncpa [#allocation5 + $0x1], 1 }

</bundles_post_ra>
